<compile_context>
chip_gen: v5e
topology: v5e:2x2
jax: 0.10.0
libtpu: 0.0.40
codegen_flags: <defaults>
</compile_context>

<pallas_src>
import math
from functools import partial

import jax
import jax.numpy as jnp
from jax import lax
from jax.experimental import pallas as pl
from jax.experimental.pallas import tpu as pltpu

# ---- toy hyper-parameters consistent with the module ----
B = 2            # batch
N = 8            # sequence length (tokens)
C = 32           # hidden_size
NUM_HEADS = 4
HEAD_DIM = C // NUM_HEADS
MLP_RATIO = 2.0
MLP_HIDDEN = int(C * MLP_RATIO)
EPS = 1e-6
ATTN_SCALE = HEAD_DIM ** (-0.5)
GELU_K = math.sqrt(2.0 / math.pi)


def _layernorm(x, eps):
    # LayerNorm without affine params (elementwise_affine=False), biased variance.
    mu = jnp.mean(x, axis=-1, keepdims=True)
    xc = x - mu
    var = jnp.mean(xc * xc, axis=-1, keepdims=True)
    return xc * lax.rsqrt(var + eps)


def _gelu_tanh(x):
    # nn.GELU(approximate='tanh')
    return 0.5 * x * (1.0 + jnp.tanh(GELU_K * (x + 0.044715 * x * x * x)))


def _dit_block_kernel(x_ref, c_ref,
                      w_ada_ref, b_ada_ref,
                      w_qkv_ref, b_qkv_ref,
                      w_proj_ref, b_proj_ref,
                      w_fc1_ref, b_fc1_ref,
                      w_fc2_ref, b_fc2_ref,
                      o_ref,
                      *, num_heads, head_dim, eps, attn_scale):
    H, D = num_heads, head_dim
    x = x_ref[0]                      # (N, C)   one sample per grid step
    c = c_ref[0]                      # (1, C)   its conditioning row
    Ch = x.shape[-1]

    # ---- adaLN modulation: Linear(SiLU(c)) on ONE row, lane-dense (1,6C) result ----
    c_silu = c * (1.0 / (1.0 + jnp.exp(-c)))
    mod = jnp.dot(c_silu, w_ada_ref[...],
                  preferred_element_type=jnp.float32) + b_ada_ref[...]       # (1, 6C)
    shift_msa = mod[:, 0 * Ch:1 * Ch]
    scale_msa = mod[:, 1 * Ch:2 * Ch]
    gate_msa  = mod[:, 2 * Ch:3 * Ch]
    shift_mlp = mod[:, 3 * Ch:4 * Ch]
    scale_mlp = mod[:, 4 * Ch:5 * Ch]
    gate_mlp  = mod[:, 5 * Ch:6 * Ch]

    # ---- attention branch ----
    xn = _layernorm(x, eps)
    xm = xn * (1.0 + scale_msa) + shift_msa                                   # modulate2

    # Single fused QKV matmul (96-lane output) + bias.
    qkv = jnp.dot(xm, w_qkv_ref[...],
                  preferred_element_type=jnp.float32) + b_qkv_ref[...]        # (N, 3C)
    q = qkv[:, 0 * Ch:1 * Ch]
    k = qkv[:, 1 * Ch:2 * Ch]
    v = qkv[:, 2 * Ch:3 * Ch]

    # Per-head attention (static unroll over H=4), exact softmax.
    dn_qkT = (((1,), (1,)), ((), ()))   # contract last dims: (N,D)x(N,D) -> (N,N)
    o_heads = []
    for h in range(H):
        qh = q[:, h * D:(h + 1) * D]
        kh = k[:, h * D:(h + 1) * D]
        vh = v[:, h * D:(h + 1) * D]
        s = lax.dot_general(qh, kh, dn_qkT,
                            preferred_element_type=jnp.float32) * attn_scale  # (N, N)
        s = s - jnp.max(s, axis=-1, keepdims=True)
        p = jnp.exp(s)
        p = p / jnp.sum(p, axis=-1, keepdims=True)
        o_heads.append(jnp.dot(p, vh, preferred_element_type=jnp.float32))    # (N, D)
    o = jnp.concatenate(o_heads, axis=-1)                                     # (N, C)

    # Single output-projection matmul (contract full C at once).
    attn = jnp.dot(o, w_proj_ref[...],
                   preferred_element_type=jnp.float32) + b_proj_ref[...]      # (N, C)
    x = x + gate_msa * attn

    # ---- MLP branch ----
    xn2 = _layernorm(x, eps)
    xm2 = xn2 * (1.0 + scale_mlp) + shift_mlp
    h1 = jnp.dot(xm2, w_fc1_ref[...],
                 preferred_element_type=jnp.float32) + b_fc1_ref[...]         # (N, MLP_HIDDEN)
    h1 = _gelu_tanh(h1)
    h2 = jnp.dot(h1, w_fc2_ref[...],
                 preferred_element_type=jnp.float32) + b_fc2_ref[...]         # (N, C)

    x = x + gate_mlp * h2
    o_ref[0] = x.astype(o_ref.dtype)


def dit_block_forward(x, c, z, params):
    """x: (B, N, C), c: (B, 1, C); z accepted for parity with the torch forward (unused)."""
    del z  # unused in DiTBlock.forward
    (w_ada, b_ada, w_qkv, b_qkv, w_proj, b_proj,
     w_fc1, b_fc1, w_fc2, b_fc2) = params
    Bx, Nx, Cx = x.shape
    H = NUM_HEADS
    D = Cx // H

    kernel = partial(_dit_block_kernel,
                     num_heads=H, head_dim=D, eps=EPS, attn_scale=D ** (-0.5))

    def resident(arr):
        # Whole weight resident in VMEM; same block for every grid step.
        nd = arr.ndim
        return pl.BlockSpec(arr.shape, lambda b, _nd=nd: (0,) * _nd)

    weights = (w_ada, b_ada, w_qkv, b_qkv, w_proj, b_proj,
               w_fc1, b_fc1, w_fc2, b_fc2)

    out = pl.pallas_call(
        kernel,
        out_shape=jax.ShapeDtypeStruct((Bx, Nx, Cx), x.dtype),
        grid=(Bx,),
        in_specs=[pl.BlockSpec((1, Nx, Cx), lambda b: (b, 0, 0)),   # x (per-sample)
                  pl.BlockSpec((1, 1, Cx), lambda b: (b, 0, 0))]    # c (per-sample)
                 + [resident(w) for w in weights],
        out_specs=pl.BlockSpec((1, Nx, Cx), lambda b: (b, 0, 0)),
        compiler_params=pltpu.CompilerParams(
            dimension_semantics=("parallel",)),                      # shards across TCs on v7x
    )(x, c, *weights)

    return out


# ---- pure-JAX reference (same math, exact softmax) for a correctness check ----
def dit_block_reference(x, c, params):
    (w_ada, b_ada, w_qkv, b_qkv, w_proj, b_proj,
     w_fc1, b_fc1, w_fc2, b_fc2) = params
    c_silu = c * jax.nn.sigmoid(c)                                  # (B,1,C)
    mod = jnp.einsum('bnc,cd->bnd', c_silu, w_ada) + b_ada          # (B,1,6C)
    sm, scm, gm, sp, scp, gp = jnp.split(mod, 6, axis=-1)

    xn = _layernorm(x, EPS)
    xm = xn * (1.0 + scm) + sm
    qkv = jnp.einsum('bnc,cd->bnd', xm, w_qkv) + b_qkv              # (B,N,3C)
    q, k, v = jnp.split(qkv, 3, axis=-1)
    q = q.reshape(B, N, NUM_HEADS, HEAD_DIM)
    k = k.reshape(B, N, NUM_HEADS, HEAD_DIM)
    v = v.reshape(B, N, NUM_HEADS, HEAD_DIM)
    s = jnp.einsum('bqhd,bkhd->bhqk', q, k) * ATTN_SCALE
    p = jax.nn.softmax(s, axis=-1)
    a = jnp.einsum('bhqk,bkhd->bqhd', p, v).reshape(B, N, C)
    a = jnp.einsum('bnc,cd->bnd', a, w_proj) + b_proj
    x = x + gm * a

    xn2 = _layernorm(x, EPS)
    xm2 = xn2 * (1.0 + scp) + sp
    h = _gelu_tanh(jnp.einsum('bnc,cd->bnd', xm2, w_fc1) + b_fc1)
    y = jnp.einsum('bnh,hc->bnc', h, w_fc2) + b_fc2
    return x + gp * y


def init_params(key):
    ks = jax.random.split(key, 10)

    def lin(k, fan_in, fan_out):
        # weights stored as (in, out), i.e. transposed relative to nn.Linear.weight
        scale = 1.0 / math.sqrt(fan_in)
        return jax.random.uniform(k, (fan_in, fan_out), jnp.float32, -scale, scale)

    w_ada = lin(ks[0], C, 6 * C)
    b_ada = jax.random.normal(ks[1], (1, 6 * C), jnp.float32) * 0.02
    w_qkv = lin(ks[2], C, 3 * C)
    b_qkv = jax.random.normal(ks[3], (1, 3 * C), jnp.float32) * 0.02
    w_proj = lin(ks[4], C, C)
    b_proj = jax.random.normal(ks[5], (1, C), jnp.float32) * 0.02
    w_fc1 = lin(ks[6], C, MLP_HIDDEN)
    b_fc1 = jax.random.normal(ks[7], (1, MLP_HIDDEN), jnp.float32) * 0.02
    w_fc2 = lin(ks[8], MLP_HIDDEN, C)
    b_fc2 = jax.random.normal(ks[9], (1, C), jnp.float32) * 0.02
    return (w_ada, b_ada, w_qkv, b_qkv, w_proj, b_proj, w_fc1, b_fc1, w_fc2, b_fc2)


if __name__ == "__main__":
    key = jax.random.PRNGKey(0)
    k_x, k_c, k_z, k_p = jax.random.split(key, 4)
    x = jax.random.normal(k_x, (B, N, C), jnp.float32)
    c = jax.random.normal(k_c, (B, 1, C), jnp.float32)
    z = jax.random.normal(k_z, (B, N, C), jnp.float32)   # unused, signature parity
    params = init_params(k_p)

    out = dit_block_forward(x, c, z, params)
    out = jax.block_until_ready(out)

    ref = dit_block_reference(x, c, params)
    assert out.shape == (B, N, C)
    assert jnp.max(jnp.abs(out - ref)) < 2e-4, "Pallas kernel mismatch vs JAX reference"
    print("KERNEL_OK")
</pallas_src>

<mosaic_0001>
module attributes {stable_mosaic.version = 11 : i64} {
  func.func @_dit_block_kernel(%arg0: i32, %arg1: memref<1x8x32xf32, #tpu.memory_space<vmem>>, %arg2: memref<1x1x32xf32, #tpu.memory_space<vmem>>, %arg3: memref<32x192xf32, #tpu.memory_space<vmem>>, %arg4: memref<1x192xf32, #tpu.memory_space<vmem>>, %arg5: memref<32x96xf32, #tpu.memory_space<vmem>>, %arg6: memref<1x96xf32, #tpu.memory_space<vmem>>, %arg7: memref<32x32xf32, #tpu.memory_space<vmem>>, %arg8: memref<1x32xf32, #tpu.memory_space<vmem>>, %arg9: memref<32x64xf32, #tpu.memory_space<vmem>>, %arg10: memref<1x64xf32, #tpu.memory_space<vmem>>, %arg11: memref<64x32xf32, #tpu.memory_space<vmem>>, %arg12: memref<1x32xf32, #tpu.memory_space<vmem>>, %arg13: memref<1x8x32xf32, #tpu.memory_space<vmem>>) attributes {dimension_semantics = [#tpu.dimension_semantics<parallel>], iteration_bounds = array<i64: 2>, scalar_prefetch = 0 : i64, scratch_operands = 0 : i64, tpu.core_type = #tpu.core_type<tc>, window_params = [{transform_indices = @transform_0, window_bounds = array<i64: 1, 8, 32>}, {transform_indices = @transform_1, window_bounds = array<i64: 1, 1, 32>}, {pipeline_mode = #tpu.pipeline_mode<synchronous>, transform_indices = @transform_2, window_bounds = array<i64: 32, 192>}, {pipeline_mode = #tpu.pipeline_mode<synchronous>, transform_indices = @transform_3, window_bounds = array<i64: 1, 192>}, {pipeline_mode = #tpu.pipeline_mode<synchronous>, transform_indices = @transform_4, window_bounds = array<i64: 32, 96>}, {pipeline_mode = #tpu.pipeline_mode<synchronous>, transform_indices = @transform_5, window_bounds = array<i64: 1, 96>}, {pipeline_mode = #tpu.pipeline_mode<synchronous>, transform_indices = @transform_6, window_bounds = array<i64: 32, 32>}, {pipeline_mode = #tpu.pipeline_mode<synchronous>, transform_indices = @transform_7, window_bounds = array<i64: 1, 32>}, {pipeline_mode = #tpu.pipeline_mode<synchronous>, transform_indices = @transform_8, window_bounds = array<i64: 32, 64>}, {pipeline_mode = #tpu.pipeline_mode<synchronous>, transform_indices = @transform_9, window_bounds = array<i64: 1, 64>}, {pipeline_mode = #tpu.pipeline_mode<synchronous>, transform_indices = @transform_10, window_bounds = array<i64: 64, 32>}, {pipeline_mode = #tpu.pipeline_mode<synchronous>, transform_indices = @transform_11, window_bounds = array<i64: 1, 32>}, {transform_indices = @transform_12, window_bounds = array<i64: 1, 8, 32>}]} {
    %c0 = arith.constant 0 : index
    %c0_0 = arith.constant 0 : index
    %c0_1 = arith.constant 0 : index
    %0 = vector.load %arg1[%c0, %c0_0, %c0_1] : memref<1x8x32xf32, #tpu.memory_space<vmem>>, vector<1x8x32xf32>
    %1 = vector.shape_cast %0 : vector<1x8x32xf32> to vector<8x32xf32>
    %c0_2 = arith.constant 0 : index
    %c0_3 = arith.constant 0 : index
    %c0_4 = arith.constant 0 : index
    %2 = vector.load %arg2[%c0_2, %c0_3, %c0_4] : memref<1x1x32xf32, #tpu.memory_space<vmem>>, vector<1x1x32xf32>
    %3 = vector.shape_cast %2 : vector<1x1x32xf32> to vector<1x32xf32>
    %cst = arith.constant 0.000000e+00 : f32
    %4 = vector.broadcast %cst : f32 to vector<1x32xf32>
    %5 = arith.subf %4, %3 : vector<1x32xf32>
    %6 = math.exp %5 : vector<1x32xf32>
    %cst_5 = arith.constant 1.000000e+00 : f32
    %7 = vector.broadcast %cst_5 : f32 to vector<1x32xf32>
    %8 = arith.addf %7, %6 : vector<1x32xf32>
    %cst_6 = arith.constant 1.000000e+00 : f32
    %9 = vector.broadcast %cst_6 : f32 to vector<1x32xf32>
    %10 = arith.divf %9, %8 : vector<1x32xf32>
    %11 = arith.mulf %3, %10 : vector<1x32xf32>
    %c0_7 = arith.constant 0 : index
    %c0_8 = arith.constant 0 : index
    %12 = vector.load %arg3[%c0_7, %c0_8] : memref<32x192xf32, #tpu.memory_space<vmem>>, vector<32x192xf32>
    %cst_9 = arith.constant dense<0.000000e+00> : vector<1x192xf32>
    %13 = tpu.matmul %11, %12, %cst_9 {dimension_numbers = #tpu.dot_dimension_numbers<[1], [0], [0], [1], [0, 0, 1, 1], [], []>} : vector<1x32xf32>, vector<32x192xf32>, vector<1x192xf32> -> vector<1x192xf32>
    %c0_10 = arith.constant 0 : index
    %c0_11 = arith.constant 0 : index
    %14 = vector.load %arg4[%c0_10, %c0_11] : memref<1x192xf32, #tpu.memory_space<vmem>>, vector<1x192xf32>
    %15 = arith.addf %13, %14 : vector<1x192xf32>
    %16 = vector.extract_strided_slice %15 {offsets = [0, 0], sizes = [1, 32], strides = [1, 1]} : vector<1x192xf32> to vector<1x32xf32>
    %17 = vector.extract_strided_slice %15 {offsets = [0, 32], sizes = [1, 32], strides = [1, 1]} : vector<1x192xf32> to vector<1x32xf32>
    %18 = vector.extract_strided_slice %15 {offsets = [0, 64], sizes = [1, 32], strides = [1, 1]} : vector<1x192xf32> to vector<1x32xf32>
    %19 = vector.extract_strided_slice %15 {offsets = [0, 96], sizes = [1, 32], strides = [1, 1]} : vector<1x192xf32> to vector<1x32xf32>
    %20 = vector.extract_strided_slice %15 {offsets = [0, 128], sizes = [1, 32], strides = [1, 1]} : vector<1x192xf32> to vector<1x32xf32>
    %21 = vector.extract_strided_slice %15 {offsets = [0, 160], sizes = [1, 32], strides = [1, 1]} : vector<1x192xf32> to vector<1x32xf32>
    %cst_12 = arith.constant dense<0.000000e+00> : vector<8xf32>
    %22 = vector.multi_reduction <add>, %1, %cst_12 [1] : vector<8x32xf32> to vector<8xf32>
    %23 = vector.shape_cast %22 : vector<8xf32> to vector<8x1xf32>
    %cst_13 = arith.constant 3.200000e+01 : f32
    %24 = vector.broadcast %cst_13 : f32 to vector<8x1xf32>
    %25 = arith.divf %23, %24 : vector<8x1xf32>
    %26 = vector.broadcast %25 : vector<8x1xf32> to vector<8x32xf32>
    %27 = arith.subf %1, %26 : vector<8x32xf32>
    %28 = arith.mulf %27, %27 : vector<8x32xf32>
    %cst_14 = arith.constant dense<0.000000e+00> : vector<8xf32>
    %29 = vector.multi_reduction <add>, %28, %cst_14 [1] : vector<8x32xf32> to vector<8xf32>
    %30 = vector.shape_cast %29 : vector<8xf32> to vector<8x1xf32>
    %cst_15 = arith.constant 3.200000e+01 : f32
    %31 = vector.broadcast %cst_15 : f32 to vector<8x1xf32>
    %32 = arith.divf %30, %31 : vector<8x1xf32>
    %cst_16 = arith.constant 9.99999997E-7 : f32
    %33 = vector.broadcast %cst_16 : f32 to vector<8x1xf32>
    %34 = arith.addf %32, %33 : vector<8x1xf32>
    %35 = math.rsqrt %34 : vector<8x1xf32>
    %36 = vector.broadcast %35 : vector<8x1xf32> to vector<8x32xf32>
    %37 = arith.mulf %27, %36 : vector<8x32xf32>
    %cst_17 = arith.constant 1.000000e+00 : f32
    %38 = vector.broadcast %cst_17 : f32 to vector<1x32xf32>
    %39 = arith.addf %38, %17 : vector<1x32xf32>
    %40 = vector.broadcast %39 : vector<1x32xf32> to vector<8x32xf32>
    %41 = arith.mulf %37, %40 : vector<8x32xf32>
    %42 = vector.broadcast %16 : vector<1x32xf32> to vector<8x32xf32>
    %43 = arith.addf %41, %42 : vector<8x32xf32>
    %c0_18 = arith.constant 0 : index
    %c0_19 = arith.constant 0 : index
    %44 = vector.load %arg5[%c0_18, %c0_19] : memref<32x96xf32, #tpu.memory_space<vmem>>, vector<32x96xf32>
    %cst_20 = arith.constant dense<0.000000e+00> : vector<8x96xf32>
    %45 = tpu.matmul %43, %44, %cst_20 {dimension_numbers = #tpu.dot_dimension_numbers<[1], [0], [0], [1], [0, 0, 1, 1], [], []>} : vector<8x32xf32>, vector<32x96xf32>, vector<8x96xf32> -> vector<8x96xf32>
    %c0_21 = arith.constant 0 : index
    %c0_22 = arith.constant 0 : index
    %46 = vector.load %arg6[%c0_21, %c0_22] : memref<1x96xf32, #tpu.memory_space<vmem>>, vector<1x96xf32>
    %47 = vector.broadcast %46 : vector<1x96xf32> to vector<8x96xf32>
    %48 = arith.addf %45, %47 : vector<8x96xf32>
    %49 = vector.extract_strided_slice %48 {offsets = [0, 0], sizes = [8, 32], strides = [1, 1]} : vector<8x96xf32> to vector<8x32xf32>
    %50 = vector.extract_strided_slice %48 {offsets = [0, 32], sizes = [8, 32], strides = [1, 1]} : vector<8x96xf32> to vector<8x32xf32>
    %51 = vector.extract_strided_slice %48 {offsets = [0, 64], sizes = [8, 32], strides = [1, 1]} : vector<8x96xf32> to vector<8x32xf32>
    %52 = vector.extract_strided_slice %49 {offsets = [0, 0], sizes = [8, 8], strides = [1, 1]} : vector<8x32xf32> to vector<8x8xf32>
    %53 = vector.extract_strided_slice %50 {offsets = [0, 0], sizes = [8, 8], strides = [1, 1]} : vector<8x32xf32> to vector<8x8xf32>
    %54 = vector.extract_strided_slice %51 {offsets = [0, 0], sizes = [8, 8], strides = [1, 1]} : vector<8x32xf32> to vector<8x8xf32>
    %cst_23 = arith.constant dense<0.000000e+00> : vector<8x8xf32>
    %55 = tpu.matmul %52, %53, %cst_23 {dimension_numbers = #tpu.dot_dimension_numbers<[1], [1], [0], [0], [0, 0, 1, 0], [], []>} : vector<8x8xf32>, vector<8x8xf32>, vector<8x8xf32> -> vector<8x8xf32>
    %cst_24 = arith.constant 0.353553385 : f32
    %56 = vector.broadcast %cst_24 : f32 to vector<8x8xf32>
    %57 = arith.mulf %55, %56 : vector<8x8xf32>
    %cst_25 = arith.constant dense<0xFF800000> : vector<8xf32>
    %58 = vector.multi_reduction <maximumf>, %57, %cst_25 [1] : vector<8x8xf32> to vector<8xf32>
    %59 = vector.shape_cast %58 : vector<8xf32> to vector<8x1xf32>
    %60 = vector.broadcast %59 : vector<8x1xf32> to vector<8x8xf32>
    %61 = arith.subf %57, %60 : vector<8x8xf32>
    %62 = math.exp %61 : vector<8x8xf32>
    %cst_26 = arith.constant dense<0.000000e+00> : vector<8xf32>
    %63 = vector.multi_reduction <add>, %62, %cst_26 [1] : vector<8x8xf32> to vector<8xf32>
    %64 = vector.shape_cast %63 : vector<8xf32> to vector<8x1xf32>
    %65 = vector.broadcast %64 : vector<8x1xf32> to vector<8x8xf32>
    %66 = arith.divf %62, %65 : vector<8x8xf32>
    %cst_27 = arith.constant dense<0.000000e+00> : vector<8x8xf32>
    %67 = tpu.matmul %66, %54, %cst_27 {dimension_numbers = #tpu.dot_dimension_numbers<[1], [0], [0], [1], [0, 0, 1, 1], [], []>} : vector<8x8xf32>, vector<8x8xf32>, vector<8x8xf32> -> vector<8x8xf32>
    %68 = vector.extract_strided_slice %49 {offsets = [0, 8], sizes = [8, 8], strides = [1, 1]} : vector<8x32xf32> to vector<8x8xf32>
    %69 = vector.extract_strided_slice %50 {offsets = [0, 8], sizes = [8, 8], strides = [1, 1]} : vector<8x32xf32> to vector<8x8xf32>
    %70 = vector.extract_strided_slice %51 {offsets = [0, 8], sizes = [8, 8], strides = [1, 1]} : vector<8x32xf32> to vector<8x8xf32>
    %cst_28 = arith.constant dense<0.000000e+00> : vector<8x8xf32>
    %71 = tpu.matmul %68, %69, %cst_28 {dimension_numbers = #tpu.dot_dimension_numbers<[1], [1], [0], [0], [0, 0, 1, 0], [], []>} : vector<8x8xf32>, vector<8x8xf32>, vector<8x8xf32> -> vector<8x8xf32>
    %cst_29 = arith.constant 0.353553385 : f32
    %72 = vector.broadcast %cst_29 : f32 to vector<8x8xf32>
    %73 = arith.mulf %71, %72 : vector<8x8xf32>
    %cst_30 = arith.constant dense<0xFF800000> : vector<8xf32>
    %74 = vector.multi_reduction <maximumf>, %73, %cst_30 [1] : vector<8x8xf32> to vector<8xf32>
    %75 = vector.shape_cast %74 : vector<8xf32> to vector<8x1xf32>
    %76 = vector.broadcast %75 : vector<8x1xf32> to vector<8x8xf32>
    %77 = arith.subf %73, %76 : vector<8x8xf32>
    %78 = math.exp %77 : vector<8x8xf32>
    %cst_31 = arith.constant dense<0.000000e+00> : vector<8xf32>
    %79 = vector.multi_reduction <add>, %78, %cst_31 [1] : vector<8x8xf32> to vector<8xf32>
    %80 = vector.shape_cast %79 : vector<8xf32> to vector<8x1xf32>
    %81 = vector.broadcast %80 : vector<8x1xf32> to vector<8x8xf32>
    %82 = arith.divf %78, %81 : vector<8x8xf32>
    %cst_32 = arith.constant dense<0.000000e+00> : vector<8x8xf32>
    %83 = tpu.matmul %82, %70, %cst_32 {dimension_numbers = #tpu.dot_dimension_numbers<[1], [0], [0], [1], [0, 0, 1, 1], [], []>} : vector<8x8xf32>, vector<8x8xf32>, vector<8x8xf32> -> vector<8x8xf32>
    %84 = vector.extract_strided_slice %49 {offsets = [0, 16], sizes = [8, 8], strides = [1, 1]} : vector<8x32xf32> to vector<8x8xf32>
    %85 = vector.extract_strided_slice %50 {offsets = [0, 16], sizes = [8, 8], strides = [1, 1]} : vector<8x32xf32> to vector<8x8xf32>
    %86 = vector.extract_strided_slice %51 {offsets = [0, 16], sizes = [8, 8], strides = [1, 1]} : vector<8x32xf32> to vector<8x8xf32>
    %cst_33 = arith.constant dense<0.000000e+00> : vector<8x8xf32>
    %87 = tpu.matmul %84, %85, %cst_33 {dimension_numbers = #tpu.dot_dimension_numbers<[1], [1], [0], [0], [0, 0, 1, 0], [], []>} : vector<8x8xf32>, vector<8x8xf32>, vector<8x8xf32> -> vector<8x8xf32>
    %cst_34 = arith.constant 0.353553385 : f32
    %88 = vector.broadcast %cst_34 : f32 to vector<8x8xf32>
    %89 = arith.mulf %87, %88 : vector<8x8xf32>
    %cst_35 = arith.constant dense<0xFF800000> : vector<8xf32>
    %90 = vector.multi_reduction <maximumf>, %89, %cst_35 [1] : vector<8x8xf32> to vector<8xf32>
    %91 = vector.shape_cast %90 : vector<8xf32> to vector<8x1xf32>
    %92 = vector.broadcast %91 : vector<8x1xf32> to vector<8x8xf32>
    %93 = arith.subf %89, %92 : vector<8x8xf32>
    %94 = math.exp %93 : vector<8x8xf32>
    %cst_36 = arith.constant dense<0.000000e+00> : vector<8xf32>
    %95 = vector.multi_reduction <add>, %94, %cst_36 [1] : vector<8x8xf32> to vector<8xf32>
    %96 = vector.shape_cast %95 : vector<8xf32> to vector<8x1xf32>
    %97 = vector.broadcast %96 : vector<8x1xf32> to vector<8x8xf32>
    %98 = arith.divf %94, %97 : vector<8x8xf32>
    %cst_37 = arith.constant dense<0.000000e+00> : vector<8x8xf32>
    %99 = tpu.matmul %98, %86, %cst_37 {dimension_numbers = #tpu.dot_dimension_numbers<[1], [0], [0], [1], [0, 0, 1, 1], [], []>} : vector<8x8xf32>, vector<8x8xf32>, vector<8x8xf32> -> vector<8x8xf32>
    %100 = vector.extract_strided_slice %49 {offsets = [0, 24], sizes = [8, 8], strides = [1, 1]} : vector<8x32xf32> to vector<8x8xf32>
    %101 = vector.extract_strided_slice %50 {offsets = [0, 24], sizes = [8, 8], strides = [1, 1]} : vector<8x32xf32> to vector<8x8xf32>
    %102 = vector.extract_strided_slice %51 {offsets = [0, 24], sizes = [8, 8], strides = [1, 1]} : vector<8x32xf32> to vector<8x8xf32>
    %cst_38 = arith.constant dense<0.000000e+00> : vector<8x8xf32>
    %103 = tpu.matmul %100, %101, %cst_38 {dimension_numbers = #tpu.dot_dimension_numbers<[1], [1], [0], [0], [0, 0, 1, 0], [], []>} : vector<8x8xf32>, vector<8x8xf32>, vector<8x8xf32> -> vector<8x8xf32>
    %cst_39 = arith.constant 0.353553385 : f32
    %104 = vector.broadcast %cst_39 : f32 to vector<8x8xf32>
    %105 = arith.mulf %103, %104 : vector<8x8xf32>
    %cst_40 = arith.constant dense<0xFF800000> : vector<8xf32>
    %106 = vector.multi_reduction <maximumf>, %105, %cst_40 [1] : vector<8x8xf32> to vector<8xf32>
    %107 = vector.shape_cast %106 : vector<8xf32> to vector<8x1xf32>
    %108 = vector.broadcast %107 : vector<8x1xf32> to vector<8x8xf32>
    %109 = arith.subf %105, %108 : vector<8x8xf32>
    %110 = math.exp %109 : vector<8x8xf32>
    %cst_41 = arith.constant dense<0.000000e+00> : vector<8xf32>
    %111 = vector.multi_reduction <add>, %110, %cst_41 [1] : vector<8x8xf32> to vector<8xf32>
    %112 = vector.shape_cast %111 : vector<8xf32> to vector<8x1xf32>
    %113 = vector.broadcast %112 : vector<8x1xf32> to vector<8x8xf32>
    %114 = arith.divf %110, %113 : vector<8x8xf32>
    %cst_42 = arith.constant dense<0.000000e+00> : vector<8x8xf32>
    %115 = tpu.matmul %114, %102, %cst_42 {dimension_numbers = #tpu.dot_dimension_numbers<[1], [0], [0], [1], [0, 0, 1, 1], [], []>} : vector<8x8xf32>, vector<8x8xf32>, vector<8x8xf32> -> vector<8x8xf32>
    %116 = tpu.concatenate %67, %83, %99, %115 in 1 : vector<8x8xf32>, vector<8x8xf32>, vector<8x8xf32>, vector<8x8xf32> -> vector<8x32xf32>
    %c0_43 = arith.constant 0 : index
    %c0_44 = arith.constant 0 : index
    %117 = vector.load %arg7[%c0_43, %c0_44] : memref<32x32xf32, #tpu.memory_space<vmem>>, vector<32x32xf32>
    %cst_45 = arith.constant dense<0.000000e+00> : vector<8x32xf32>
    %118 = tpu.matmul %116, %117, %cst_45 {dimension_numbers = #tpu.dot_dimension_numbers<[1], [0], [0], [1], [0, 0, 1, 1], [], []>} : vector<8x32xf32>, vector<32x32xf32>, vector<8x32xf32> -> vector<8x32xf32>
    %c0_46 = arith.constant 0 : index
    %c0_47 = arith.constant 0 : index
    %119 = vector.load %arg8[%c0_46, %c0_47] : memref<1x32xf32, #tpu.memory_space<vmem>>, vector<1x32xf32>
    %120 = vector.broadcast %119 : vector<1x32xf32> to vector<8x32xf32>
    %121 = arith.addf %118, %120 : vector<8x32xf32>
    %122 = vector.broadcast %18 : vector<1x32xf32> to vector<8x32xf32>
    %123 = arith.mulf %122, %121 : vector<8x32xf32>
    %124 = arith.addf %1, %123 : vector<8x32xf32>
    %cst_48 = arith.constant dense<0.000000e+00> : vector<8xf32>
    %125 = vector.multi_reduction <add>, %124, %cst_48 [1] : vector<8x32xf32> to vector<8xf32>
    %126 = vector.shape_cast %125 : vector<8xf32> to vector<8x1xf32>
    %cst_49 = arith.constant 3.200000e+01 : f32
    %127 = vector.broadcast %cst_49 : f32 to vector<8x1xf32>
    %128 = arith.divf %126, %127 : vector<8x1xf32>
    %129 = vector.broadcast %128 : vector<8x1xf32> to vector<8x32xf32>
    %130 = arith.subf %124, %129 : vector<8x32xf32>
    %131 = arith.mulf %130, %130 : vector<8x32xf32>
    %cst_50 = arith.constant dense<0.000000e+00> : vector<8xf32>
    %132 = vector.multi_reduction <add>, %131, %cst_50 [1] : vector<8x32xf32> to vector<8xf32>
    %133 = vector.shape_cast %132 : vector<8xf32> to vector<8x1xf32>
    %cst_51 = arith.constant 3.200000e+01 : f32
    %134 = vector.broadcast %cst_51 : f32 to vector<8x1xf32>
    %135 = arith.divf %133, %134 : vector<8x1xf32>
    %cst_52 = arith.constant 9.99999997E-7 : f32
    %136 = vector.broadcast %cst_52 : f32 to vector<8x1xf32>
    %137 = arith.addf %135, %136 : vector<8x1xf32>
    %138 = math.rsqrt %137 : vector<8x1xf32>
    %139 = vector.broadcast %138 : vector<8x1xf32> to vector<8x32xf32>
    %140 = arith.mulf %130, %139 : vector<8x32xf32>
    %cst_53 = arith.constant 1.000000e+00 : f32
    %141 = vector.broadcast %cst_53 : f32 to vector<1x32xf32>
    %142 = arith.addf %141, %20 : vector<1x32xf32>
    %143 = vector.broadcast %142 : vector<1x32xf32> to vector<8x32xf32>
    %144 = arith.mulf %140, %143 : vector<8x32xf32>
    %145 = vector.broadcast %19 : vector<1x32xf32> to vector<8x32xf32>
    %146 = arith.addf %144, %145 : vector<8x32xf32>
    %c0_54 = arith.constant 0 : index
    %c0_55 = arith.constant 0 : index
    %147 = vector.load %arg9[%c0_54, %c0_55] : memref<32x64xf32, #tpu.memory_space<vmem>>, vector<32x64xf32>
    %cst_56 = arith.constant dense<0.000000e+00> : vector<8x64xf32>
    %148 = tpu.matmul %146, %147, %cst_56 {dimension_numbers = #tpu.dot_dimension_numbers<[1], [0], [0], [1], [0, 0, 1, 1], [], []>} : vector<8x32xf32>, vector<32x64xf32>, vector<8x64xf32> -> vector<8x64xf32>
    %c0_57 = arith.constant 0 : index
    %c0_58 = arith.constant 0 : index
    %149 = vector.load %arg10[%c0_57, %c0_58] : memref<1x64xf32, #tpu.memory_space<vmem>>, vector<1x64xf32>
    %150 = vector.broadcast %149 : vector<1x64xf32> to vector<8x64xf32>
    %151 = arith.addf %148, %150 : vector<8x64xf32>
    %cst_59 = arith.constant 5.000000e-01 : f32
    %152 = vector.broadcast %cst_59 : f32 to vector<8x64xf32>
    %153 = arith.mulf %152, %151 : vector<8x64xf32>
    %cst_60 = arith.constant 4.471500e-02 : f32
    %154 = vector.broadcast %cst_60 : f32 to vector<8x64xf32>
    %155 = arith.mulf %154, %151 : vector<8x64xf32>
    %156 = arith.mulf %155, %151 : vector<8x64xf32>
    %157 = arith.mulf %156, %151 : vector<8x64xf32>
    %158 = arith.addf %151, %157 : vector<8x64xf32>
    %cst_61 = arith.constant 0.797884583 : f32
    %159 = vector.broadcast %cst_61 : f32 to vector<8x64xf32>
    %160 = arith.mulf %159, %158 : vector<8x64xf32>
    %161 = math.tanh %160 : vector<8x64xf32>
    %cst_62 = arith.constant 1.000000e+00 : f32
    %162 = vector.broadcast %cst_62 : f32 to vector<8x64xf32>
    %163 = arith.addf %162, %161 : vector<8x64xf32>
    %164 = arith.mulf %153, %163 : vector<8x64xf32>
    %c0_63 = arith.constant 0 : index
    %c0_64 = arith.constant 0 : index
    %165 = vector.load %arg11[%c0_63, %c0_64] : memref<64x32xf32, #tpu.memory_space<vmem>>, vector<64x32xf32>
    %cst_65 = arith.constant dense<0.000000e+00> : vector<8x32xf32>
    %166 = tpu.matmul %164, %165, %cst_65 {dimension_numbers = #tpu.dot_dimension_numbers<[1], [0], [0], [1], [0, 0, 1, 1], [], []>} : vector<8x64xf32>, vector<64x32xf32>, vector<8x32xf32> -> vector<8x32xf32>
    %c0_66 = arith.constant 0 : index
    %c0_67 = arith.constant 0 : index
    %167 = vector.load %arg12[%c0_66, %c0_67] : memref<1x32xf32, #tpu.memory_space<vmem>>, vector<1x32xf32>
    %168 = vector.broadcast %167 : vector<1x32xf32> to vector<8x32xf32>
    %169 = arith.addf %166, %168 : vector<8x32xf32>
    %170 = vector.broadcast %21 : vector<1x32xf32> to vector<8x32xf32>
    %171 = arith.mulf %170, %169 : vector<8x32xf32>
    %172 = arith.addf %124, %171 : vector<8x32xf32>
    %c0_68 = arith.constant 0 : index
    %c0_69 = arith.constant 0 : index
    %c0_70 = arith.constant 0 : index
    %173 = vector.load %arg13[%c0_68, %c0_69, %c0_70] : memref<1x8x32xf32, #tpu.memory_space<vmem>>, vector<1x8x32xf32>
    %174 = vector.shape_cast %173 : vector<1x8x32xf32> to vector<8x32xf32>
    %175 = vector.shape_cast %172 : vector<8x32xf32> to vector<1x8x32xf32>
    tpu.vector_store %arg13[%c0_68, %c0_69, %c0_70], %175 {strides = array<i32>} : memref<1x8x32xf32, #tpu.memory_space<vmem>>, vector<1x8x32xf32>,
    return
  }
  func.func @transform_0(%arg0: i32) -> (i32, i32, i32) {
    %c0_i32 = arith.constant 0 : i32
    %c0_i32_0 = arith.constant 0 : i32
    %c0_i32_1 = arith.constant 0 : i32
    return %arg0, %c0_i32, %c0_i32_0 : i32, i32, i32
  }
  func.func @transform_1(%arg0: i32) -> (i32, i32, i32) {
    %c0_i32 = arith.constant 0 : i32
    %c0_i32_0 = arith.constant 0 : i32
    %c0_i32_1 = arith.constant 0 : i32
    return %arg0, %c0_i32, %c0_i32_0 : i32, i32, i32
  }
  func.func @transform_2(%arg0: i32) -> (i32, i32) {
    %c0_i32 = arith.constant 0 : i32
    %c0_i32_0 = arith.constant 0 : i32
    %c0_i32_1 = arith.constant 0 : i32
    return %c0_i32, %c0_i32_0 : i32, i32
  }
  func.func @transform_3(%arg0: i32) -> (i32, i32) {
    %c0_i32 = arith.constant 0 : i32
    %c0_i32_0 = arith.constant 0 : i32
    %c0_i32_1 = arith.constant 0 : i32
    return %c0_i32, %c0_i32_0 : i32, i32
  }
  func.func @transform_4(%arg0: i32) -> (i32, i32) {
    %c0_i32 = arith.constant 0 : i32
    %c0_i32_0 = arith.constant 0 : i32
    %c0_i32_1 = arith.constant 0 : i32
    return %c0_i32, %c0_i32_0 : i32, i32
  }
  func.func @transform_5(%arg0: i32) -> (i32, i32) {
    %c0_i32 = arith.constant 0 : i32
    %c0_i32_0 = arith.constant 0 : i32
    %c0_i32_1 = arith.constant 0 : i32
    return %c0_i32, %c0_i32_0 : i32, i32
  }
  func.func @transform_6(%arg0: i32) -> (i32, i32) {
    %c0_i32 = arith.constant 0 : i32
    %c0_i32_0 = arith.constant 0 : i32
    %c0_i32_1 = arith.constant 0 : i32
    return %c0_i32, %c0_i32_0 : i32, i32
  }
  func.func @transform_7(%arg0: i32) -> (i32, i32) {
    %c0_i32 = arith.constant 0 : i32
    %c0_i32_0 = arith.constant 0 : i32
    %c0_i32_1 = arith.constant 0 : i32
    return %c0_i32, %c0_i32_0 : i32, i32
  }
  func.func @transform_8(%arg0: i32) -> (i32, i32) {
    %c0_i32 = arith.constant 0 : i32
    %c0_i32_0 = arith.constant 0 : i32
    %c0_i32_1 = arith.constant 0 : i32
    return %c0_i32, %c0_i32_0 : i32, i32
  }
  func.func @transform_9(%arg0: i32) -> (i32, i32) {
    %c0_i32 = arith.constant 0 : i32
    %c0_i32_0 = arith.constant 0 : i32
    %c0_i32_1 = arith.constant 0 : i32
    return %c0_i32, %c0_i32_0 : i32, i32
  }
  func.func @transform_10(%arg0: i32) -> (i32, i32) {
    %c0_i32 = arith.constant 0 : i32
    %c0_i32_0 = arith.constant 0 : i32
    %c0_i32_1 = arith.constant 0 : i32
    return %c0_i32, %c0_i32_0 : i32, i32
  }
  func.func @transform_11(%arg0: i32) -> (i32, i32) {
    %c0_i32 = arith.constant 0 : i32
    %c0_i32_0 = arith.constant 0 : i32
    %c0_i32_1 = arith.constant 0 : i32
    return %c0_i32, %c0_i32_0 : i32, i32
  }
  func.func @transform_12(%arg0: i32) -> (i32, i32, i32) {
    %c0_i32 = arith.constant 0 : i32
    %c0_i32_0 = arith.constant 0 : i32
    %c0_i32_1 = arith.constant 0 : i32
    return %arg0, %c0_i32, %c0_i32_0 : i32, i32, i32
  }
}

</mosaic_0001>

<bundles_post_ra>
// kernel: tpu_custom_call.1
= control target key start
LH: loop header
LB: loop body
LE: loop exit
PB: predicated region body
PF: predicated region fallthrough
CT: control target
= control target key end

     0   :  { %s2148_s0 = inlined_call_operand.hbm [shape: f32[2,8,32], index: 0, kind: input, shape index: {}]   ;;  %s2149_s1 = inlined_call_operand.hbm [shape: f32[2,1,32], index: 1, kind: input, shape index: {}]   ;;  %s2150_s2 = inlined_call_operand.vmem [shape: f32[32,192], index: 2, kind: input, shape index: {}]   ;;  %s2151_s3 = inlined_call_operand.hbm [shape: f32[1,192], index: 3, kind: input, shape index: {}]   ;;  %s2152_s4 = inlined_call_operand.vmem [shape: f32[32,96], index: 4, kind: input, shape index: {}]   ;;  %s2153_s5 = inlined_call_operand.vmem [shape: f32[1,96], index: 5, kind: input, shape index: {}]   ;;  %s2154_s6 = inlined_call_operand.hbm [shape: f32[32,32], index: 6, kind: input, shape index: {}]   ;;  %s2155_s7 = inlined_call_operand.vmem [shape: f32[1,32], index: 7, kind: input, shape index: {}]   ;;  %s2156_s8 = inlined_call_operand.hbm [shape: f32[32,64], index: 8, kind: input, shape index: {}]   ;;  %s2157_s9 = inlined_call_operand.vmem [shape: f32[1,64], index: 9, kind: input, shape index: {}]   ;;  %s2158_s10 = inlined_call_operand.vmem [shape: f32[64,32], index: 10, kind: input, shape index: {}]   ;;  %s2159_s11 = inlined_call_operand.vmem [shape: f32[1,32], index: 11, kind: input, shape index: {}]   ;;  %s2160_s12 = inlined_call_operand.hbm [shape: f32[2,8,32], index: 12, kind: output, shape index: {}]  }
   0x1   :  { %2170 = sst [smem:[#allocation24_spill]] %s2151_s3 }
   0x2   :  { %2171 = sst [smem:[#allocation25_spill]] %s2154_s6 }
   0x3   :  { %2172 = sst [smem:[#allocation26_spill]] %s2156_s8 }
   0x4   :  { %2173 = sst [smem:[#allocation27_spill]] %s2160_s12 }
   0x5   :  { %17 = vsyncpa [#allocation3], 0 }
   0x6   :  { %19 = vsyncpa [#allocation3 + $0x1], 0 }
   0x7   :  { %20 = vsyncpa [#allocation6], 0 }
   0x8   :  { %22 = vsyncpa [#allocation6 + $0x1], 0 }
   0x9   :  { %23 = vsyncpa [#allocation9], 0 }
   0xa   :  { %24 = vsyncpa [#allocation4], 0 }
   0xb   :  { %26 = vsyncpa [#allocation4 + $0x1], 0  ;;  %s1771_s21 = smov 0   ;;  %s1773_s22 = smov 0  }
   0xc   :  { %s1775_s23 = smov 0   ;;  %s1777_s24 = smov 0  }
   0xd LB: > { %2174 = sst [smem:[#allocation17_spill]] %s1671_s21  ;;  %s1792_s25 = sadd.s32 4294967295, %s1683_s24   ;;  %s1683_s24 = sphi %s1777_s24, %s2196_s24   ;;  %s1679_s23 = sphi %s1775_s23, %s2198_s23   ;;  %s1675_s22 = sphi %s1773_s22, %s2200_s22   ;;  %s1671_s21 = sphi %s1771_s21, %s2199_s21  }
   0xe   : > { %2175 = sst [smem:[#allocation18_spill]] %s1679_s23  ;;  %s1287_s26 = sadd.s32 4294967294, %s1683_s24  }
   0xf   : > { %2176 = sst [smem:[#allocation19_spill]] %s1683_s24  ;;  %p52_p0 = scmp.ne.s32.totalorder %s1675_s22, %s1671_s21 }
  0x10   : > { %p53_p1 = scmp.eq.s32.totalorder %s1792_s25, 0  ;;  %p312_p2 = scmp.eq.s32.totalorder %s1792_s25, 1 }
  0x11   : > { %p318_p3 = scmp.eq.s32.totalorder %s1287_s26, 1  ;;  %p1288_p5 = scmp.ge.s32.totalorder %s1683_s24, 1 }
  0x12   : > { %p1801_p4 = por %p53_p1, %p52_p0  ;;  %p325_p7 = scmp.lt.s32.totalorder %s1683_s24, 3 }
  0x13   : > { %p1806_p6 = por %p318_p3, %p52_p0  ;;  %s2180_s3 = sld [smem:[#allocation24_spill]] }
  0x14   : > { %p1814_p8 = pnand %p1288_p5, %p325_p7  ;;  %s1685_s15 = smov [#allocation7]  }
  0x15   : > { %s2178_s28 = scalar_select %p1806_p6, 1, 0 }
  0x16   : > { %p1341_p10 = pneg %p1814_p8  ;;  %s342_s16 = sshll.u32 %s1685_s15, 4  ;;  %s343_s16 = int_to_ptr.vmem [resolvable:$true] %s342_s16 }
  0x17   : > { %2179 = sst [smem:[#allocation20_spill]] %s2178_s28  ;;  %s1686_s26 = smov [#allocation8]  }
  0x18   : > { %s2182_s6 = sld [smem:[#allocation25_spill]]  ;;  %p1826_p11 = pnand %p1341_p10, %p53_p1 }
  0x19   : > { %s340_s13 = sshll.u32 %s2180_s3, 4  ;;  %s359_s29 = sshll.u32 %s1686_s26, 4  ;;  %s341_s13 = int_to_ptr.hbm [resolvable:$true] %s340_s13  ;;  %s360_s29 = int_to_ptr.vmem [resolvable:$true] %s359_s29 }
  0x1a   : > { %1344 = dma.hbm_to_vmem [thread:$0]  (!%p1826_p11), %s341_s13, 32, %s343_s16, [#allocation6]  }
  0x1b   : > { %s1687_s30 = smov 128   ;;  %s1688_s15 = smov 8  }
  0x1c   : > { %s2184_s8 = sld [smem:[#allocation26_spill]]  ;;  %s1689_s26 = smov [#allocation10]  }
  0x1d   : > { %s1840_s13 = sadd.s32 1, %s1683_s24   ;;  %s39_s28 = sadd.s32 1, %s1679_s23 }
  0x1e   : > { %s357_s19 = sshll.u32 %s2182_s6, 4  ;;  %s376_s6 = sshll.u32 %s1689_s26, 4  ;;  %s358_s19 = int_to_ptr.hbm [resolvable:$true] %s357_s19  ;;  %s377_s6 = int_to_ptr.vmem [resolvable:$true] %s376_s6 }
  0x1f   : > { %1347 = dma.hbm_to_vmem [thread:$0]  (!%p1826_p11), %s358_s19, 512, %s360_s29, [#allocation9], %s1687_s30, %s1687_s30, %s1688_s15  }
  0x20   : > { %2185 = sst [smem:[#allocation21_spill]] %s1840_s13  ;;  %s36_s16 = ssub.s32 %s1683_s24, %s1840_s13 }
  0x21   : > { %p37_p12 = scmp.eq.s32.totalorder %s36_s16, 0  ;;  %p46_p13 = scmp.ne.s32.totalorder %s1679_s23, %s1675_s22 }
  0x22   : > { %s374_s3 = sshll.u32 %s2184_s8, 4  ;;  %p47_p0 = scmp.eq.s32.totalorder %s1683_s24, 0  ;;  %s375_s3 = int_to_ptr.hbm [resolvable:$true] %s374_s3 }
  0x23   : > { %1350 = dma.hbm_to_vmem [thread:$0]  (!%p1826_p11), %s375_s3, 512, %s377_s6, [#allocation9], %s1687_s30, %s1687_s30, %s1688_s15  }
  0x24   : > { %p1365_p3 = scmp.lt.s32.totalorder %s1683_s24, 2  ;;  %p48_p5 = por %p47_p0, %p46_p13 }
  0x25   : > { %s1850_s19 = scalar_select %p37_p12, %s1679_s23, %s39_s28  }
  0x26   : > { %p1854_p7 = por %p312_p2, %p46_p13  ;;  %s1859_s3 = sand.u32 1, %s1679_s23  }
  0x27   : > { %2186 = sst [smem:[#allocation22_spill]] %s1850_s19  ;;  %s1294_s6 = sshll.u32 %s1683_s24, 3 }
  0x28   : > { %s2187_s29 = scalar_select %p1854_p7, 1, 0 }
  0x29   : > { %s1293_s20 = sshll.u32 %s1859_s3, 3  ;;  %s407_s17 = scalar_lea.hbm %s2148_s0, %s1294_s6 }
  0x2a   : > { %2188 = sst [smem:[#allocation23_spill]] %s2187_s29  ;;  %s409_s18 = sshll.u32 %s407_s17, 4  ;;  %s410_s18 = int_to_ptr.hbm [resolvable:$true] %s409_s18 }
  0x2b   : > { %s403_s26 = scalar_lea.vmem [#allocation2], %s1293_s20  ;;  %p1868_p2 = pnand %p1365_p3, %p48_p5 }
  0x2c   : > { %s411_s28 = sshll.u32 %s403_s26, 4  ;;  %s418_s8 = sand.u32 1, %s1683_s24   ;;  %s412_s28 = int_to_ptr.vmem [resolvable:$true] %s411_s28 }
  0x2d   : > { %s424_s13 = scalar_lea.hbm %s2149_s1, %s1683_s24  ;;  %s400_s21 = scalar_lea.sflag [#allocation3], %s1859_s3 }
  0x2e   : > { %s1545_s30 = sshra.s32 %s410_s18, 4  ;;  %p1549_p11 = pneg %p1868_p2  ;;  %s1546_s30 = int_to_ptr.hbm [resolvable:$true] %s1545_s30 }
  0x2f   : > { %s1547_s6 = scalar_lea.hbm %s1546_s30, 8  ;;  %s1552_s17 = scalar_lea.hbm %s2148_s0, 16 }
  0x30   : > { %p1548_p10 = scmp.ne.s32.totalorder %s1546_s30, %s1547_s6  ;;  %p1553_p0 = scmp.lt.s32.totalorder %s1546_s30, %s2148_s0 }
  0x31   : > { %p1554_p3 = scmp.lt.s32.totalorder %s1552_s17, %s1547_s6 }
  0x32   : > { %p1550_p12 = pnand %p1549_p11, %p1548_p10 }
  0x33   : > { %p1555_p5 = por %p1554_p3, %p1553_p0 }
  0x34   : > { %p1551_p13 = pneg %p1550_p12 }
  0x36   : > { %p1556_p9 = pnand %p1555_p5, %p1551_p13 }
  0x38   : > { %1559 = shalt.err (!%p1556_p9)
}
  0x39   : > { %1354 = dma.hbm_to_vmem [thread:$0]  (!%p1868_p2), %s410_s18, 128, %s412_s28, %s400_s21  }
  0x3a   : > { %s426_s23 = sshll.u32 %s424_s13, 4  ;;  %s421_s19 = scalar_lea.vmem [#allocation5], %s1859_s3  ;;  %s427_s23 = int_to_ptr.hbm [resolvable:$true] %s426_s23 }
  0x3b   : > { %s428_s24 = sshll.u32 %s421_s19, 4  ;;  %s419_s20 = scalar_lea.sflag [#allocation6], %s418_s8  ;;  %s429_s24 = int_to_ptr.vmem [resolvable:$true] %s428_s24 }
  0x3c   : > { %s1575_s15 = sshra.s32 %s427_s23, 4  ;;  %s1582_s6 = scalar_lea.hbm %s2149_s1, 2  ;;  %s1576_s15 = int_to_ptr.hbm [resolvable:$true] %s1575_s15 }
  0x3d   : > { %s1577_s29 = scalar_lea.hbm %s1576_s15, 1  ;;  %p1583_p9 = scmp.lt.s32.totalorder %s1576_s15, %s2149_s1 }
  0x3e   : > { %p1578_p10 = scmp.ne.s32.totalorder %s1576_s15, %s1577_s29  ;;  %p1584_p0 = scmp.lt.s32.totalorder %s1582_s6, %s1577_s29 }
  0x40   : > { %p1580_p12 = pnand %p1578_p10, %p1549_p11  ;;  %p1585_p3 = por %p1584_p0, %p1583_p9 }
  0x42   : > { %p1581_p13 = pneg %p1580_p12 }
  0x44   : > { %p1586_p5 = pnand %p1585_p3, %p1581_p13 }
  0x46   : > { %1589 = shalt.err (!%p1586_p5)
}
  0x47   : > { %1357 = dma.hbm_to_vmem [thread:$0]  (!%p1868_p2), %s427_s23, 16, %s429_s24, %s419_s20  }
  0x48   : > { %437 = sbr.rel (%p1814_p8) target bundleno = 2356 (0x934), region = 68  ;;  %s1906_s8 = sand.u32 (!%p1814_p8), 1, %s1675_s22  }
  0x49   : > { %s1296_s13 = sshll.u32 (!%p1814_p8), %s1906_s8, 3  ;;  %s440_s3 = scalar_lea.sflag (!%p1814_p8), [#allocation3], %s1906_s8 }
  0x4a   : > { %s443_s29 = scalar_lea.vmem (!%p1814_p8), [#allocation2], %s1296_s13 }
  0x4d   : > { %1650 = dma.done.wait (%p1801_p4), %s440_s3, 128  }
  0x4e   : > { %1652 = vsyncadd (%p1801_p4), %s440_s3, 4294967168  ;;  %s449_s24 = sand.u32 1, %s1792_s25   ;;  %s452_s18 = scalar_lea.vmem [#allocation5], %s1906_s8 }
  0x4f   : > { %s450_s14 = scalar_lea.sflag [#allocation6], %s449_s24 }
  0x50   : > { %1654 = dma.done.wait (%p1801_p4), %s450_s14, 16  }
  0x51   : > { %1656 = vsyncadd (%p1801_p4), %s450_s14, 4294967280 }
  0x52   : > { %1658 = dma.done.wait (%p53_p1), [#allocation6], 32  }
  0x53   : > { %1660 = vsyncadd (%p53_p1), [#allocation6], 4294967264 }
  0x54   : > { %1662 = dma.done.wait (%p53_p1), [#allocation9], 1024  }
  0x55   : > { %1664 = vsyncadd (%p53_p1), [#allocation9], 4294966272  ;;  %vm549_vm0 = vcmask 261120   ;;  %v1930_v0 = vld [vmem:[%s443_s29] sm:$0xff]  ;;  %v541_v1 = vld [vmem:[%s2150_s2 + $0x30] sm:$0xff]  ;;  %v1690_v22 = vmov 32.0  }
  0x56   : > { %v539_v2 = vld [vmem:[%s2150_s2 + $0x20] sm:$0xff]  ;;  %v593_v3 = vsel %vm549_vm0, %v1930_v0, 0.0  ;;  %565 = vmatpush.msra.mxu1 %v541_v1  ;;  %v537_v5 = vld [vmem:[%s2150_s2 + $0x10] sm:$0xff]  ;;  %s1691_s12 = smov 96   ;;  %v634_v40 = vld [vmem:[%s2152_s4 + $0x18] sm:$0xff]  ;;  %s1692_s16 = smov 88  }
  0x57   : > { %v514_v4 = vld [vmem:[%s452_s18] sm:$0x1]  ;;  %594 = vadd.xlane.f32.xlu0 %v593_v3  ;;  %v1955_v34 = vld [vmem:[#allocation7] sm:$0x3]  ;;  %654 = vmatpush.msra.mxu2 %v634_v40  ;;  %v632_v45 = vld [vmem:[%s2152_s4 + $0x8] sm:$0xff]  ;;  %s1693_s27 = smov 80  }
  0x58   : > { %v515_v6 = vsub.f32 0.0, %v514_v4  ;;  %566 = vmatpush.msra.mxu1 %v539_v2  ;;  %v535_v7 = vld [vmem:[%s2150_s2] sm:$0xff]  ;;  %v545_v35 = vperm.slane %v1955_v34, 0  ;;  %v633_v41 = vld [vmem:[%s2152_s4 + $0x10] sm:$0xff]  ;;  %s1694_s26 = smov 112   ;;  %s1695_s23 = smov 120  }
  0x59   : > { %655 = vmatpush.msra.mxu2 %v633_v41  ;;  %v631_v46 = vld [vmem:[%s2152_s4] sm:$0xff]  ;;  %s1696_s19 = smov 72   ;;  %s1697_s20 = smov 104   ;;  %vm665_vm9 = vcmask 64512  }
  0x5a   : > { %v516_v8 = vmul.f32 1.442695, %v515_v6  ;;  %567 = vmatpush.msra.mxu1 %v537_v5  ;;  %v1423_v59 = vld [vmem:[%s2153_s5] ss:$0 sm:$0xff]  ;;  %s1698_s15 = smov 56   ;;  %s1699_s18 = smov 40  }
  0x5b   : > { %656 = vmatpush.msra.mxu2 %v632_v45  ;;  %s1700_s28 = smov 64   ;;  %s1320_s29 = sshll.u32 %s1792_s25, 3 }
  0x5c   : > { %1427 = vpow2.f32 %v516_v8  ;;  %568 = vmatpush.msra.mxu1 %v535_v7 }
  0x5d   : > { %657 = vmatpush.msra.mxu2 %v631_v46 }
  0x62   : > { %v1428_v9 = vpop.eup %1427 }
  0x63   : > { %v518_v10 = vadd.f32 1.0, %v1428_v9 }
  0x65   : > { %1429 = vrcp.f32 %v518_v10  ;;  %v530_v13 = vand.u32 2147483648, %v518_v10  ;;  %vm524_vm1 = vweird.f32 %v518_v10  ;;  %v528_v15 = vand.u32 2147483647, %v518_v10 }
  0x66   : > { %1431 = vrcp.f32 %v1690_v22  ;;  %v536_v22 = vld [vmem:[%s2150_s2 + $0x8] sm:$0xff] }
  0x67   : > { %v531_v17 = vor.u32 1.1754944e-38, %v530_v13  ;;  %vm529_vm4 = vcmp.eq.f32.partialorder %v528_v15, 8.507059e+37 }
  0x6b   : > { %v1430_v11 = vpop.eup %1429 }
  0x6c   : > { %v520_v12 = vmul.f32 %v1430_v11, %v518_v10  ;;  %vm525_vm2 = vweird.f32 %v1430_v11  ;;  %v1432_v23 = vpop.eup %1431 }
  0x6d   : > { %vm526_vm3 = vmor %vm524_vm1, %vm525_vm2  ;;  %v597_v24 = vmul.f32 32.0, %v1432_v23  ;;  %vm601_vm5 = vweird.f32 %v1432_v23 }
  0x6e   : > { %v521_v14 = vsub.f32 1.0, %v520_v12 }
  0x6f   : > { %v598_v25 = vsub.f32 1.0, %v597_v24 }
  0x70   : > { %v522_v16 = vmul.f32 %v1430_v11, %v521_v14 }
  0x71   : > { %v599_v26 = vmul.f32 %v1432_v23, %v598_v25 }
  0x72   : > { %v523_v18 = vadd.f32 %v1430_v11, %v522_v16 }
  0x73   : > { %v600_v27 = vadd.f32 %v1432_v23, %v599_v26 }
  0x74   : > { %v527_v19 = vsel %vm526_vm3, %v1430_v11, %v523_v18  ;;  %v542_v18 = vld [vmem:[%s2150_s2 + $0x38] sm:$0xff] }
  0x75   : > { %v532_v20 = vsel %vm529_vm4, %v531_v17, %v527_v19  ;;  %v1950_v28 = vsel %vm601_vm5, %v1432_v23, %v600_v27  ;;  %585 = vmatpush.msrb.mxu1 %v542_v18  ;;  %v540_v19 = vld [vmem:[%s2150_s2 + $0x28] sm:$0xff] }
  0x76   : > { %v1946_v21 = vmul.f32 %v532_v20, %v514_v4  ;;  %v538_v20 = vld [vmem:[%s2150_s2 + $0x18] sm:$0xff] }
  0x77   : > { %586 = vmatpush.msrb.mxu1 %v540_v19 }
  0x78   : > { %1301 = vmatmul.msk.f32.vlgmr.msra.gmra.mxu1 %vm549_vm0, %v1946_v21 }
  0x79   : > { %587 = vmatpush.msrb.mxu1 %v538_v20 }
  0x7b   : > { %588 = vmatpush.msrb.mxu1 %v536_v22 }
  0x80   : > { %1302 = vmatmul.msk.f32.vlgmr.msrb.gmra.mxu1 %vm549_vm0, %v1946_v21 }
  0xca   : > { %v595_v29 = vpop.xlane.xlu0 %594 }
  0xcb   : > { %v603_v30 = vmul.f32 %v1950_v28, %v595_v29 }
  0xcd   : > { %v604_v31 = vsub.f32 %v1930_v0, %v603_v30 }
  0xcf   : > { %v605_v32 = vmul.f32 %v604_v31, %v604_v31 }
  0xd1   : > { %v606_v33 = vsel %vm549_vm0, %v605_v32, 0.0 }
  0xd2   : > { %607 = vadd.xlane.f32.xlu0 %v606_v33 }
  0xf5   : > { %v570_v36 = vpop.f32.mrf.mxu1 }
  0xf6   : > { %v571_v37 = vadd.f32 %v570_v36, %v545_v35 }
  0xf8   : > { %v622_v38 = vadd.f32 1.0, %v571_v37  ;;  %v1972_v56 = vperm.slane %v571_v37, 0 }
  0xfa   : > { %v623_v39 = vperm.slane %v622_v38, 0 }
  0xfc   : > { %625 = vrot.lane.b32.xlu1 %v623_v39, %s1691_s12 }
 0x145   : > { %v608_v42 = vpop.xlane.xlu0 %607 }
 0x146   : > { %v609_v43 = vmul.f32 %v608_v42, %v1950_v28 }
 0x148   : > { %v610_v44 = vadd.f32 1e-06, %v609_v43 }
 0x14a   : > { %1433 = vrsqrt.f32 %v610_v44  ;;  %vm617_vm6 = vweird.f32 %v610_v44 }
 0x150   : > { %v1434_v47 = vpop.eup %1433 }
 0x151   : > { %v612_v48 = vmul.f32 %v1434_v47, %v610_v44  ;;  %vm618_vm7 = vweird.f32 %v1434_v47 }
 0x152   : > { %vm619_vm8 = vmor %vm617_vm6, %vm618_vm7 }
 0x153   : > { %v613_v49 = vmul.f32 %v1434_v47, %v612_v48 }
 0x155   : > { %v614_v50 = vmul.f32 0.5, %v613_v49 }
 0x157   : > { %v615_v51 = vsub.f32 1.5, %v614_v50 }
 0x159   : > { %v616_v52 = vmul.f32 %v1434_v47, %v615_v51 }
 0x15b   : > { %v620_v53 = vsel %vm619_vm8, %v1434_v47, %v616_v52 }
 0x15c   : > { %v621_v54 = vmul.f32 %v620_v53, %v604_v31 }
 0x16e   : > { %v626_v55 = vpop.permute.xlu1 %625 }
 0x16f   : > { %v628_v57 = vmul.f32 %v626_v55, %v621_v54 }
 0x171   : > { %v630_v58 = vadd.f32 %v1972_v56, %v628_v57 }
 0x173   : > { %1303 = vmatmul.msk.f32.vlgmr.msra.gmra.mxu2 %vm549_vm0, %v630_v58 }
 0x1f6   : > { %v659_v60 = vpop.f32.mrf.mxu2 }
 0x1f7   : > { %v1979_v61 = vadd.f32 %v1423_v59, %v659_v60 }
 0x1f9   : > { %743 = vrot.lane.b32.xlu0 %v1979_v61, %s1692_s16  ;;  %822 = vrot.lane.b32.xlu2 %v1979_v61, %s1693_s27  ;;  %s1701_s16 = smov 48   ;;  %s1702_s27 = smov 8  }
 0x1fa   : > { %663 = vrot.lane.b32.xlu1 %v1979_v61, %s1691_s12 }
 0x201   : > { %820 = vrot.lane.b32.xlu2 %v1979_v61, %s1694_s26  ;;  %s1703_s26 = smov 24  }
 0x202   : > { %741 = vrot.lane.b32.xlu1 %v1979_v61, %s1695_s23  ;;  %s1704_s23 = smov 16  }
 0x209   : > { %901 = vrot.lane.b32.xlu2 %v1979_v61, %s1696_s19 }
 0x20a   : > { %899 = vrot.lane.b32.xlu1 %v1979_v61, %s1697_s20 }
 0x253   : > { %v823_v62 = vpop.permute.xlu2 %822 }
 0x254   : > { %1310 = vmatpush.xpose.msk.msrb.mxu2 %vm665_vm9, %v823_v62 }
 0x25b   : > { %v821_v63 = vpop.permute.xlu2 %820 }
 0x25c   : > { %1311 = vmatmul.msk.f32.vlgmr.msrb.gmra.mxu2 %vm665_vm9, %v821_v63 }
 0x263   : > { %v902_v2 = vpop.permute.xlu2 %901 }
 0x26b   : > { %v744_v1 = vpop.permute.xlu0 %743 }
 0x26c   : > { %v664_v3 = vpop.permute.xlu1 %663  ;;  %1307 = vmatpush.xpose.msk.msra.mxu0 %vm665_vm9, %v744_v1 }
 0x26d   : > { %1304 = vmatpush.xpose.msk.msra.mxu3 %vm665_vm9, %v664_v3 }
 0x270   : > { %1313 = vmatpush.xpose.msk.msrb.mxu0 %vm665_vm9, %v902_v2  ;;  %1305 = vmatmul.msk.f32.vlgmr.msra.gmra.mxu3 %vm665_vm9, %v1979_v61 }
 0x274   : > { %v742_v4 = vpop.permute.xlu1 %741 }
 0x275   : > { %1308 = vmatmul.msk.f32.vlgmr.msra.gmra.mxu0 %vm665_vm9, %v742_v4 }
 0x27c   : > { %v900_v5 = vpop.permute.xlu1 %899 }
 0x27d   : > { %1314 = vmatmul.msk.f32.vlgmr.msrb.gmra.mxu0 %vm665_vm9, %v900_v5 }
 0x2df   : > { %v845_v6 = vpop.f32.mrf.mxu2 }
 0x2e0   : > { %v848_v7 = vmul.f32 0.35355338, %v845_v6 }
 0x2e2   : > { %v849_v8 = vsel %vm665_vm9, %v848_v7, -inf }
 0x2e3   : > { %850 = vmax.xlane.f32.xlu0 %v849_v8 }
 0x2f2   : > { %v766_v9 = vpop.f32.mrf.mxu0 }
 0x2f3   : > { %v769_v10 = vmul.f32 0.35355338, %v766_v9  ;;  %v687_v11 = vpop.f32.mrf.mxu3 }
 0x2f4   : > { %v690_v12 = vmul.f32 0.35355338, %v687_v11 }
 0x2f5   : > { %v770_v13 = vsel %vm665_vm9, %v769_v10, -inf }
 0x2f6   : > { %771 = vmax.xlane.f32.xlu1 %v770_v13  ;;  %v691_v14 = vsel %vm665_vm9, %v690_v12, -inf }
 0x2f7   : > { %692 = vmax.xlane.f32.xlu2 %v691_v14  ;;  %794 = vrot.lane.b32.xlu0 %v1979_v61, %s1698_s15  ;;  %s1705_s15 = smov 32  }
 0x2fa   : > { %v924_v15 = vpop.f32.mrf.mxu0 }
 0x2fb   : > { %v927_v16 = vmul.f32 0.35355338, %v924_v15 }
 0x2fd   : > { %v928_v17 = vsel %vm665_vm9, %v927_v16, -inf }
 0x2ff   : > { %929 = vmax.xlane.f32.xlu2 %v928_v17 }
 0x356   : > { %v851_v23 = vpop.xlane.xlu0 %850 }
 0x357   : > { %v852_v24 = vsub.f32 %v848_v7, %v851_v23 }
 0x359   : > { %v853_v25 = vmul.f32 1.442695, %v852_v24 }
 0x35b   : > { %1435 = vpow2.f32 %v853_v25 }
 0x361   : > { %v2017_v26 = vpop.eup %1435 }
 0x362   : > { %v855_v27 = vsel %vm665_vm9, %v2017_v26, 0.0 }
 0x363   : > { %856 = vadd.xlane.f32.xlu0 %v855_v27 }
 0x369   : > { %v772_v29 = vpop.xlane.xlu1 %771  ;;  %v795_v30 = vpop.permute.xlu0 %794 }
 0x36a   : > { %v773_v31 = vsub.f32 %v769_v10, %v772_v29  ;;  %v693_v32 = vpop.xlane.xlu2 %692  ;;  %815 = vmatpush.msra.mxu1 %v795_v30 }
 0x36b   : > { %v694_v33 = vsub.f32 %v690_v12, %v693_v32 }
 0x36c   : > { %v774_v35 = vmul.f32 1.442695, %v773_v31 }
 0x36d   : > { %v695_v36 = vmul.f32 1.442695, %v694_v33 }
 0x36e   : > { %1437 = vpow2.f32 %v774_v35 }
 0x36f   : > { %1439 = vpow2.f32 %v695_v36 }
 0x372   : > { %v930_v21 = vpop.xlane.xlu2 %929 }
 0x373   : > { %v931_v37 = vsub.f32 %v927_v16, %v930_v21 }
 0x374   : > { %v1438_v38 = vpop.eup %1437 }
 0x375   : > { %v2021_v39 = vpop.eup %1439  ;;  %v932_v40 = vmul.f32 1.442695, %v931_v37  ;;  %v776_v41 = vsel %vm665_vm9, %v1438_v38, 0.0  ;;  %v2055_v37 = vpop.f32.mrf.mxu1 }
 0x376   : > { %777 = vadd.xlane.f32.xlu1 %v776_v41  ;;  %v697_v42 = vsel %vm665_vm9, %v2021_v39, 0.0 }
 0x377   : > { %1441 = vpow2.f32 %v932_v40  ;;  %698 = vadd.xlane.f32.xlu2 %v697_v42  ;;  %952 = vrot.lane.b32.xlu0 %v1979_v61, %s1699_s18  ;;  %v998_v42 = vld [vmem:[#allocation8 + $0x18] sm:$0xff]  ;;  %s2191_s18 = sld [smem:[#allocation27_spill]] }
 0x378   : > { %1018 = vmatpush.msra.mxu2 %v998_v42 }
 0x37d   : > { %v2027_v43 = vpop.eup %1441 }
 0x37e   : > { %v934_v44 = vsel %vm665_vm9, %v2027_v43, 0.0 }
 0x37f   : > { %935 = vadd.xlane.f32.xlu2 %v934_v44  ;;  %v996_v44 = vld [vmem:[#allocation8 + $0x8] sm:$0xff] }
 0x38f   : > { %715 = vrot.lane.b32.xlu1 %v1979_v61, %s1700_s28 }
 0x397   : > { %873 = vrot.lane.b32.xlu2 %v1979_v61, %s1701_s16  ;;  %s512_s16 = scalar_lea.vmem [#allocation11], %s1296_s13  ;;  %s1625_s13 = scalar_lea.hbm %s2191_s18, 16 }
 0x3d6   : > { %v2034_v45 = vpop.xlane.xlu0 %856 }
 0x3d7   : > { %1443 = vrcp.f32 %v2034_v45  ;;  %v869_v20 = vand.u32 2147483648, %v2034_v45  ;;  %vm863_vm6 = vweird.f32 %v2034_v45  ;;  %v867_v23 = vand.u32 2147483647, %v2034_v45 }
 0x3d9   : > { %v870_v33 = vor.u32 1.1754944e-38, %v869_v20 }
 0x3dd   : > { %v2037_v49 = vpop.eup %1443 }
 0x3de   : > { %v859_v55 = vmul.f32 %v2037_v49, %v2034_v45  ;;  %vm864_vm4 = vweird.f32 %v2037_v49 }
 0x3df   : > { %vm865_vm8 = vmor %vm863_vm6, %vm864_vm4 }
 0x3e0   : > { %v860_v63 = vsub.f32 1.0, %v859_v55 }
 0x3e2   : > { %v861_v10 = vmul.f32 %v2037_v49, %v860_v63 }
 0x3e4   : > { %v862_v19 = vadd.f32 %v2037_v49, %v861_v10 }
 0x3e6   : > { %v866_v30 = vsel %vm865_vm8, %v2037_v49, %v862_v19 }
 0x3e9   : > { %v778_v46 = vpop.xlane.xlu1 %777  ;;  %v953_v47 = vpop.permute.xlu0 %952 }
 0x3ea   : > { %1445 = vrcp.f32 %v778_v46  ;;  %v699_v48 = vpop.xlane.xlu2 %698  ;;  %973 = vmatpush.msrb.mxu1 %v953_v47  ;;  %v790_v58 = vand.u32 2147483648, %v778_v46  ;;  %v788_v61 = vand.u32 2147483647, %v778_v46  ;;  %vm784_vm11 = vweird.f32 %v778_v46 }
 0x3eb   : > { %1447 = vrcp.f32 %v699_v48  ;;  %v711_v4 = vand.u32 2147483648, %v699_v48  ;;  %vm705_vm15 = vweird.f32 %v699_v48  ;;  %v709_v7 = vand.u32 2147483647, %v699_v48 }
 0x3ec   : > { %v791_v2 = vor.u32 1.1754944e-38, %v790_v58  ;;  %vm789_vm14 = vcmp.eq.f32.partialorder %v788_v61, 8.507059e+37 }
 0x3ed   : > { %v712_v13 = vor.u32 1.1754944e-38, %v711_v4  ;;  %vm710_vm2 = vcmp.eq.f32.partialorder %v709_v7, 8.507059e+37 }
 0x3f0   : > { %v1446_v50 = vpop.eup %1445 }
 0x3f1   : > { %v1448_v51 = vpop.eup %1447  ;;  %v780_v52 = vmul.f32 %v1446_v50, %v778_v46  ;;  %vm785_vm10 = vweird.f32 %v1446_v50 }
 0x3f2   : > { %v701_v53 = vmul.f32 %v1448_v51, %v699_v48  ;;  %v936_v54 = vpop.xlane.xlu2 %935  ;;  %vm706_vm12 = vweird.f32 %v1448_v51  ;;  %vm786_vm13 = vmor %vm784_vm11, %vm785_vm10  ;;  %vm868_vm11 = vcmp.eq.f32.partialorder %v867_v23, 8.507059e+37  ;;  %v1111_v23 = vld [vmem:[%s2158_s10 + $0x28] sm:$0xff] }
 0x3f3   : > { %v781_v57 = vsub.f32 1.0, %v780_v52  ;;  %1449 = vrcp.f32 %v936_v54  ;;  %vm707_vm1 = vmor %vm705_vm15, %vm706_vm12  ;;  %v948_v15 = vand.u32 2147483648, %v936_v54  ;;  %v946_v17 = vand.u32 2147483647, %v936_v54 }
 0x3f4   : > { %v702_v59 = vsub.f32 1.0, %v701_v53  ;;  %vm942_vm5 = vweird.f32 %v936_v54  ;;  %v871_v36 = vsel %vm868_vm11, %v870_v33, %v866_v30  ;;  %vm991_vm12 = vcmask 130048   ;;  %v1106_v30 = vld [vmem:[%s2158_s10] sm:$0xff] }
 0x3f5   : > { %v782_v60 = vmul.f32 %v1446_v50, %v781_v57  ;;  %v949_v24 = vor.u32 1.1754944e-38, %v948_v15  ;;  %vm947_vm10 = vcmp.eq.f32.partialorder %v946_v17, 8.507059e+37  ;;  %v872_v21 = vmul.f32 %v2017_v26, %v871_v36  ;;  %v995_v26 = vld [vmem:[#allocation8] sm:$0xff] }
 0x3f6   : > { %v703_v62 = vmul.f32 %v1448_v51, %v702_v59 }
 0x3f7   : > { %v783_v1 = vadd.f32 %v1446_v50, %v782_v60 }
 0x3f8   : > { %v704_v3 = vadd.f32 %v1448_v51, %v703_v62 }
 0x3f9   : > { %v1450_v5 = vpop.eup %1449  ;;  %v787_v6 = vsel %vm786_vm13, %v1446_v50, %v783_v1  ;;  %vm993_vm13 = vcmask 195584  }
 0x3fa   : > { %v792_v8 = vsel %vm789_vm14, %v791_v2, %v787_v6  ;;  %v938_v9 = vmul.f32 %v1450_v5, %v936_v54  ;;  %v708_v12 = vsel %vm707_vm1, %v1448_v51, %v704_v3  ;;  %vm943_vm3 = vweird.f32 %v1450_v5  ;;  %v874_v32 = vpop.permute.xlu2 %873  ;;  %v1424_v51 = vld [vmem:[%s2155_s7] ss:$0 sm:$0xff]  ;;  %v1069_v2 = vld [vmem:[#allocation10 + $0x18] sm:$0xff] }
 0x3fb   : > { %v793_v11 = vmul.f32 %v1438_v38, %v792_v8  ;;  %v713_v18 = vsel %vm710_vm2, %v712_v13, %v708_v12  ;;  %vm944_vm7 = vmor %vm942_vm5, %vm943_vm3  ;;  %v1067_v3 = vld [vmem:[#allocation10 + $0x8] sm:$0xff]  ;;  %v546_v8 = vperm.slane %v1955_v34, 1  ;;  %vm1118_vm1 = vcmask 523264  }
 0x3fc   : > { %v939_v14 = vsub.f32 1.0, %v938_v9  ;;  %v714_v27 = vmul.f32 %v2021_v39, %v713_v18  ;;  %v1113_v34 = vld [vmem:[%s2158_s10 + $0x38] sm:$0xff] }
 0x3fd   : > { %1309 = vmatmul.msk.f32.vlgmr.msra.gmra.mxu1 %vm665_vm9, %v793_v11  ;;  %v591_v11 = vadd.f32 %v2055_v37, %v546_v8  ;;  %1130 = vmatpush.msra.mxu0 %v1113_v34 }
 0x3fe   : > { %v940_v16 = vmul.f32 %v1450_v5, %v939_v14 }
 0x3ff   : > { %v1058_v14 = vadd.f32 1.0, %v591_v11 }
 0x400   : > { %v941_v22 = vadd.f32 %v1450_v5, %v940_v16 }
 0x401   : > { %v716_v25 = vpop.permute.xlu1 %715  ;;  %v1059_v17 = vperm.slane %v1058_v14, 0 }
 0x402   : > { %v945_v29 = vsel %vm944_vm7, %v1450_v5, %v941_v22  ;;  %736 = vmatpush.msrb.mxu3 %v716_v25  ;;  %v1112_v22 = vld [vmem:[%s2158_s10 + $0x30] sm:$0xff]  ;;  %v1109_v25 = vld [vmem:[%s2158_s10 + $0x18] sm:$0xff] }
 0x403   : > { %v950_v31 = vsel %vm947_vm10, %v949_v24, %v945_v29  ;;  %1306 = vmatmul.msk.f32.vlgmr.msrb.gmra.mxu3 %vm665_vm9, %v714_v27  ;;  %1131 = vmatpush.msra.mxu0 %v1112_v22  ;;  %v1110_v24 = vld [vmem:[%s2158_s10 + $0x20] sm:$0xff]  ;;  %v1108_v27 = vld [vmem:[%s2158_s10 + $0x10] sm:$0xff]  ;;  %v1107_v29 = vld [vmem:[%s2158_s10 + $0x8] sm:$0xff] }
 0x404   : > { %894 = vmatpush.msra.mxu3 %v874_v32  ;;  %v951_v35 = vmul.f32 %v2027_v43, %v950_v31  ;;  %v997_v43 = vld [vmem:[#allocation8 + $0x10] sm:$0xff]  ;;  %v1425_v31 = vld [vmem:[%s2157_s9] ss:$0 sm:$0xff] }
 0x405   : > { %1019 = vmatpush.msra.mxu2 %v997_v43  ;;  %1132 = vmatpush.msra.mxu0 %v1111_v23  ;;  %v1426_v43 = vld [vmem:[%s2159_s11] ss:$0 sm:$0xff] }
 0x406   : > { %1315 = vmatmul.msk.f32.vlgmr.msrb.gmra.mxu1 %vm665_vm9, %v951_v35  ;;  %1089 = vmatpush.msrb.mxu3 %v1069_v2 }
 0x407   : > { %1020 = vmatpush.msra.mxu2 %v996_v44  ;;  %1133 = vmatpush.msra.mxu0 %v1110_v24 }
 0x409   : > { %1021 = vmatpush.msra.mxu2 %v995_v26  ;;  %1134 = vmatpush.msra.mxu0 %v1109_v25 }
 0x40b   : > { %1312 = vmatmul.msk.f32.vlgmr.msra.gmra.mxu3 %vm665_vm9, %v872_v21  ;;  %1135 = vmatpush.msra.mxu0 %v1108_v27 }
 0x40d   : > { %1136 = vmatpush.msra.mxu0 %v1107_v29 }
 0x40f   : > { %1137 = vmatpush.msra.mxu0 %v1106_v30 }
 0x47a   : > { %v817_v38 = vpop.f32.mrf.mxu1 }
 0x47b   : > { %979 = vrot.lane.b32.xlu1 %v817_v38, %s1702_s27  ;;  %s1167_s27 = sshll.u32 %s512_s16, 4  ;;  %s1168_s27 = int_to_ptr.vmem [resolvable:$true] %s1167_s27 }
 0x483   : > { %v975_v39 = vpop.f32.mrf.mxu1 }
 0x484   : > { %987 = vrot.lane.b32.xlu0 %v975_v39, %s1703_s26 }
 0x486   : > { %v738_v40 = vpop.f32.mrf.mxu3 }
 0x48e   : > { %v896_v41 = vpop.f32.mrf.mxu3 }
 0x48f   : > { %983 = vrot.lane.b32.xlu2 %v896_v41, %s1704_s23 }
 0x4e9   : > { %v984_v47 = vpop.permute.xlu2 %983 }
 0x4ed   : > { %v980_v45 = vpop.permute.xlu1 %979 }
 0x4ee   : > { %v990_v46 = vsel %vm665_vm9, %v738_v40, %v980_v45  ;;  %v1142_v45 = vperm.slane %v591_v11, 0 }
 0x4ef   : > { %v992_v49 = vsel %vm991_vm12, %v990_v46, %v984_v47 }
 0x4f6   : > { %v988_v48 = vpop.permute.xlu0 %987 }
 0x4f7   : > { %v994_v50 = vsel %vm993_vm13, %v992_v49, %v988_v48 }
 0x4f8   : > { %1316 = vmatmul.msk.f32.vlgmr.msra.gmra.mxu2 %vm549_vm0, %v994_v50 }
 0x57b   : > { %v1023_v52 = vpop.f32.mrf.mxu2 }
 0x57c   : > { %v1024_v53 = vadd.f32 %v1424_v51, %v1023_v52 }
 0x57e   : > { %1027 = vrot.lane.b32.xlu1 %v1024_v53, %s1700_s28 }
 0x5f0   : > { %v1028_v54 = vpop.permute.xlu1 %1027 }
 0x5f1   : > { %v1030_v55 = vmul.f32 %v1028_v54, %v1972_v56 }
 0x5f3   : > { %1032 = vrot.lane.b32.xlu2 %v1030_v55, %s1700_s28  ;;  %s1165_s28 = scalar_lea.hbm %s2191_s18, %s1320_s29 }
 0x5f4   : > { %s1169_s26 = sshll.u32 %s1165_s28, 4  ;;  %s1170_s26 = int_to_ptr.hbm [resolvable:$true] %s1169_s26 }
 0x5f5   : > { %s1619_s23 = sshra.s32 %s1170_s26, 4  ;;  %s1620_s23 = int_to_ptr.hbm [resolvable:$true] %s1619_s23 }
 0x5f6   : > { %p1626_p2 = scmp.lt.s32.totalorder %s1620_s23, %s2191_s18 }
 0x5fb   : > { %1062 = vrot.lane.b32.xlu2 %v1972_v56, %s1705_s15  ;;  %v1068_v56 = vld [vmem:[#allocation10 + $0x10] sm:$0xff] }
 0x5fc   : > { %1090 = vmatpush.msrb.mxu3 %v1068_v56 }
 0x5fe   : > { %1091 = vmatpush.msrb.mxu3 %v1067_v3 }
 0x64d   : > { %v1033_v57 = vpop.permute.xlu2 %1032 }
 0x64e   : > { %v2068_v58 = vadd.f32 %v1033_v57, %v1930_v0  ;;  %v1066_v0 = vld [vmem:[#allocation10] sm:$0xff] }
 0x64f   : > { %1092 = vmatpush.msrb.mxu3 %v1066_v0 }
 0x650   : > { %v1036_v59 = vsel %vm549_vm0, %v2068_v58, 0.0 }
 0x651   : > { %1037 = vadd.xlane.f32.xlu0 %v1036_v59 }
 0x655   : > { %v1063_v19 = vpop.permute.xlu2 %1062 }
 0x6c4   : > { %v1038_v60 = vpop.xlane.xlu0 %1037 }
 0x6c5   : > { %v1039_v61 = vmul.f32 %v1038_v60, %v1950_v28 }
 0x6c7   : > { %v1040_v62 = vsub.f32 %v2068_v58, %v1039_v61 }
 0x6c9   : > { %v1041_v63 = vmul.f32 %v1040_v62, %v1040_v62 }
 0x6cb   : > { %v1042_v1 = vsel %vm549_vm0, %v1041_v63, 0.0 }
 0x6cc   : > { %1043 = vadd.xlane.f32.xlu1 %v1042_v1 }
 0x73f   : > { %v1044_v4 = vpop.xlane.xlu1 %1043 }
 0x740   : > { %v1045_v5 = vmul.f32 %v1044_v4, %v1950_v28 }
 0x742   : > { %v1046_v6 = vadd.f32 1e-06, %v1045_v5 }
 0x744   : > { %1451 = vrsqrt.f32 %v1046_v6  ;;  %vm1053_vm14 = vweird.f32 %v1046_v6 }
 0x74a   : > { %v1452_v7 = vpop.eup %1451 }
 0x74b   : > { %v1048_v9 = vmul.f32 %v1452_v7, %v1046_v6  ;;  %vm1054_vm9 = vweird.f32 %v1452_v7 }
 0x74c   : > { %vm1055_vm15 = vmor %vm1053_vm14, %vm1054_vm9 }
 0x74d   : > { %v1049_v10 = vmul.f32 %v1452_v7, %v1048_v9 }
 0x74f   : > { %v1050_v12 = vmul.f32 0.5, %v1049_v10 }
 0x751   : > { %v1051_v13 = vsub.f32 1.5, %v1050_v12 }
 0x753   : > { %v1052_v15 = vmul.f32 %v1452_v7, %v1051_v13 }
 0x755   : > { %v1056_v16 = vsel %vm1055_vm15, %v1452_v7, %v1052_v15 }
 0x756   : > { %v1057_v18 = vmul.f32 %v1056_v16, %v1040_v62 }
 0x758   : > { %v1060_v28 = vmul.f32 %v1059_v17, %v1057_v18 }
 0x75a   : > { %v1065_v20 = vadd.f32 %v1063_v19, %v1060_v28 }
 0x75c   : > { %1317 = vmatmul.msk.f32.vlgmr.msrb.gmra.mxu3 %vm549_vm0, %v1065_v20 }
 0x7df   : > { %v1094_v32 = vpop.f32.mrf.mxu3 }
 0x7e0   : > { %v1095_v33 = vadd.f32 %v1425_v31, %v1094_v32 }
 0x7e2   : > { %v1098_v35 = vmul.f32 0.044715, %v1095_v33  ;;  %v1097_v40 = vmul.f32 0.5, %v1095_v33 }
 0x7e4   : > { %v1099_v36 = vmul.f32 %v1098_v35, %v1095_v33 }
 0x7e6   : > { %v1100_v21 = vmul.f32 %v1099_v36, %v1095_v33 }
 0x7e8   : > { %v1101_v37 = vadd.f32 %v1100_v21, %v1095_v33 }
 0x7ea   : > { %v1102_v38 = vmul.f32 0.7978846, %v1101_v37 }
 0x7ec   : > { %1453 = vtanh.f32 %v1102_v38 }
 0x7f2   : > { %v1454_v39 = vpop.eup %1453 }
 0x7f3   : > { %v1104_v41 = vadd.f32 1.0, %v1454_v39 }
 0x7f5   : > { %v1105_v42 = vmul.f32 %v1104_v41, %v1097_v40 }
 0x7f7   : > { %1318 = vmatmul.msk.f32.vlgmr.msra.gmra.mxu0 %vm1118_vm1, %v1105_v42 }
 0x874   : > { %v1139_v44 = vpop.f32.mrf.mxu0 }
 0x875   : > { %v1140_v26 = vadd.f32 %v1426_v43, %v1139_v44 }
 0x877   : > { %1144 = vrot.lane.b32.xlu2 %v1140_v26, %s1705_s15  ;;  %s1155_s15 = scalar_lea.sflag [#allocation4], %s1906_s8 }
 0x8d1   : > { %v1145_v46 = vpop.permute.xlu2 %1144 }
 0x8d2   : > { %v1147_v47 = vmul.f32 %v1145_v46, %v1142_v45 }
 0x8d4   : > { %1149 = vrot.lane.b32.xlu2 %v1147_v47, %s1691_s12  ;;  %s1621_s12 = scalar_lea.hbm %s1620_s23, 8 }
 0x8d5   : > { %p1622_p1 = scmp.ne.s32.totalorder %s1620_s23, %s1621_s12  ;;  %p1627_p11 = scmp.lt.s32.totalorder %s1625_s13, %s1621_s12 }
 0x8d7   : > { %p1623_p4 = pnand %p1622_p1, %p1854_p7  ;;  %p1628_p10 = por %p1627_p11, %p1626_p2 }
 0x8d9   : > { %p1624_p8 = pneg %p1623_p4 }
 0x8db   : > { %p1629_p12 = pnand %p1628_p10, %p1624_p8 }
 0x92e   : > { %v1150_v48 = vpop.permute.xlu2 %1149 }
 0x92f   : > { %v1152_v49 = vadd.f32 %v1150_v48, %v2068_v58 }
 0x931   : > { %1153 = vst.msk [vmem:[%s512_s16] sm:$0xff] %vm549_vm0, %v1152_v49 }
 0x932   : > { %1632 = shalt.err (!%p1629_p12)
}
 0x933   : > { %1339 = dma.vmem_to_hbm [thread:$0]  (%p1854_p7), %s1168_s27, 128, %s1170_s26, %s1155_s15  }
 0x934 PF: > { %s2192_s8 = sld [smem:[#allocation17_spill]] }
 0x935   : > { %s2194_s17 = sld [smem:[#allocation19_spill]] }
 0x93a   : > { %s1181_s21 = sand.u32 1, %s2192_s8  }
 0x93b   : > { %p2195_p13 = scmp.ge.s32.totalorder %s2194_s17, 2  ;;  %s1182_s29 = scalar_lea.sflag [#allocation4], %s1181_s21 }
 0x93d   : > { %p1359_p9 = pnand %p2195_p13, %p1806_p6 }
 0x93f   : > { %p1360_p0 = pneg %p1359_p9 }
 0x941   : > { %1666 = dma.done.wait (%p1360_p0), %s1182_s29, 128  }
 0x942   : > { %1668 = vsyncadd (%p1360_p0), %s1182_s29, 4294967168  ;;  %s2196_s24 = sld [smem:[#allocation21_spill]]  ;;  %s2199_s21 = smov %s1675_s22 }
 0x943   : > { %s2197_s14 = sld [smem:[#allocation18_spill]] }
 0x944   : > { %s2198_s23 = sld [smem:[#allocation22_spill]] }
 0x948   : > { %p29_p3 = scmp.ge.s32.totalorder %s2196_s24, 4  }
 0x949   : > { %s2200_s22 = smov %s2197_s14 }
 0x94a   :  { %31 = sbr.rel (!%p29_p3) target bundleno = 13 (0xd), region = 138 }
 0x94f   :  { %1188 = vsyncpa [#allocation3], 1 }
 0x950   :  { %1190 = vsyncpa [#allocation3 + $0x1], 1 }
 0x951   :  { %1191 = vsyncpa [#allocation6], 1 }
 0x952   :  { %1193 = vsyncpa [#allocation6 + $0x1], 1 }
 0x953   :  { %1194 = vsyncpa [#allocation9], 1 }
 0x954   :  { %1195 = vsyncpa [#allocation4], 1 }
 0x955   :  { %1197 = vsyncpa [#allocation4 + $0x1], 1 }

</bundles_post_ra>
